<compile_context>
chip_gen: v7x
topology: tpu7x:2x2x1
jax: 0.10.0
libtpu: 0.0.40
codegen_flags: <defaults>
</compile_context>

<pallas_src>
import functools
from math import sqrt

import jax
import jax.numpy as jnp
from jax.experimental import pallas as pl
from jax.experimental.pallas import tpu as pltpu


def _attention_kernel(x_ref, wqkv_ref, wo_ref, b_ref,
                      o_ref, acc_ref, *, scale, mxu_dtype):
    # x_ref:    (bt, n, dim)    bf16 activations for this batch tile (resident across heads)
    # wqkv_ref: (1, 3, dim, d)  this head's stacked [Wq^T, Wk^T, Wv^T] slices
    # wo_ref:   (1, d, dim)     this head's Wout^T slice
    # b_ref:    (1, dim)        output-projection bias (f32, resident)
    # o_ref:    (bt, n, dim)    output block (revisited across the head axis)
    # acc_ref:  (bt*n, dim)     f32 accumulator over heads
    bt, n, dim = x_ref.shape
    d = wqkv_ref.shape[-1]
    h = pl.program_id(1)

    @pl.when(h == 0)
    def _():
        acc_ref[...] = jnp.zeros_like(acc_ref)

    # Flatten the batch tile into one lane-dense (bt*n, dim) slab (already bf16).
    x2d = x_ref[...].reshape(bt * n, dim)

    w = wqkv_ref[0]          # (3, dim, d); leading-dim picks below are free views
    wo = wo_ref[0]           # (d, dim)

    # Per-head Q/K/V projections (MXU, bf16 in / f32 accumulate).
    q = jnp.dot(x2d, w[0], preferred_element_type=jnp.float32)   # (bt*n, d)
    k = jnp.dot(x2d, w[1], preferred_element_type=jnp.float32)
    v = jnp.dot(x2d, w[2], preferred_element_type=jnp.float32)

    q3 = q.reshape(bt, n, d).astype(mxu_dtype)
    k3 = k.reshape(bt, n, d).astype(mxu_dtype)
    v3 = v.reshape(bt, n, d).astype(mxu_dtype)

    # Scores: contract last dims with a leading batch dim (no explicit k.T).
    s = jnp.einsum('bqd,bkd->bqk', q3, k3,
                   preferred_element_type=jnp.float32) * scale    # (bt, n, n) f32
    # Numerically-stable softmax in f32; denominator via EUP reciprocal.
    s = s - jnp.max(s, axis=-1, keepdims=True)
    e = jnp.exp(s)
    inv = pl.reciprocal(jnp.sum(e, axis=-1, keepdims=True), approx=True)
    attn = (e * inv).astype(mxu_dtype)

    ctx = jnp.einsum('bqk,bkd->bqd', attn, v3,
                     preferred_element_type=jnp.float32)           # (bt, n, d)
    ctx2d = ctx.reshape(bt * n, d).astype(mxu_dtype)

    # This head's slice of the output projection, accumulated over heads.
    acc_ref[...] += jnp.dot(ctx2d, wo, preferred_element_type=jnp.float32)

    @pl.when(h == pl.num_programs(1) - 1)
    def _():
        y = acc_ref[...] + b_ref[...]                              # add bias once
        o_ref[...] = y.reshape(bt, n, dim).astype(o_ref.dtype)


def attention_pallas(x, w_qkv, w_out, b_out, *, heads, batch_tile=None,
                     mxu_dtype=jnp.bfloat16):
    """x: (b, n, dim); w_qkv: (3*dim, dim); w_out: (dim, dim); b_out: (dim,)."""
    b, n, dim = x.shape
    assert dim % heads == 0, "dim must be divisible by heads"
    d = dim // heads
    scale = dim ** (-0.5)   # module intentionally scales by full dim (not head_dim)
    out_dtype = x.dtype

    if batch_tile is None:
        # Fuse small batches into one grid step; keep per-step slab moderate.
        batch_tile = b if b * n <= 512 else 1
    assert b % batch_tile == 0, "batch must be divisible by batch_tile"
    bt = batch_tile

    # Cast activations once in the wrapper (halves x DMA, removes per-head cast).
    x_in = x.astype(mxu_dtype)

    # Pre-split weights per head in the wrapper (no in-kernel lane slicing).
    wqkv_t = jnp.transpose(w_qkv)                      # (dim, 3*dim) = Wqkv^T

    def per_head_in(mat):                              # (dim, dim) -> (heads, dim, d)
        return jnp.transpose(mat.reshape(dim, heads, d), (1, 0, 2))

    # Stack q/k/v per head into a single streamed weight tensor (heads, 3, dim, d).
    w_h = jnp.stack([per_head_in(wqkv_t[:, i * dim:(i + 1) * dim]) for i in range(3)],
                    axis=1).astype(mxu_dtype)
    wo_h = jnp.transpose(w_out).reshape(heads, d, dim).astype(mxu_dtype)  # (heads, d, dim)
    bout = b_out.reshape(1, dim).astype(jnp.float32)

    kernel = functools.partial(_attention_kernel, scale=scale, mxu_dtype=mxu_dtype)

    grid = (b // bt, heads)   # reduction (heads) axis last

    return pl.pallas_call(
        kernel,
        out_shape=jax.ShapeDtypeStruct((b, n, dim), out_dtype),
        grid_spec=pltpu.PrefetchScalarGridSpec(
            num_scalar_prefetch=0,
            grid=grid,
            in_specs=[
                pl.BlockSpec((bt, n, dim), lambda i, h: (i, 0, 0)),      # x (resident across heads)
                pl.BlockSpec((1, 3, dim, d), lambda i, h: (h, 0, 0, 0)), # [Wq,Wk,Wv]^T per head
                pl.BlockSpec((1, d, dim), lambda i, h: (h, 0, 0)),       # Wout^T per head
                pl.BlockSpec((1, dim), lambda i, h: (0, 0)),             # bias (resident)
            ],
            out_specs=pl.BlockSpec((bt, n, dim), lambda i, h: (i, 0, 0)),
            scratch_shapes=[pltpu.VMEM((bt * n, dim), jnp.float32)],     # head accumulator
        ),
        compiler_params=pltpu.CompilerParams(
            dimension_semantics=("parallel", "arbitrary"),
            vmem_limit_bytes=64 * 1024 * 1024,
        ),
    )(x_in, w_h, wo_h, bout)


def attention_reference(x, w_qkv, w_out, b_out, *, heads):
    """Pure-JAX f32 reference mirroring the PyTorch forward."""
    b, n, dim = x.shape
    d = dim // heads
    scale = dim ** (-0.5)
    qkv = jnp.einsum('bnd,ed->bne', x, w_qkv)                 # Linear no-bias: x @ W^T
    q, k, v = jnp.split(qkv, 3, axis=-1)

    def to_heads(t):
        return t.reshape(b, n, heads, d).transpose(0, 2, 1, 3)   # b h n d

    q, k, v = map(to_heads, (q, k, v))
    dots = jnp.einsum('bhid,bhjd->bhij', q, k) * scale
    attn = jax.nn.softmax(dots, axis=-1)
    out = jnp.einsum('bhij,bhjd->bhid', attn, v)
    out = out.transpose(0, 2, 1, 3).reshape(b, n, dim)
    return jnp.einsum('bnd,ed->bne', out, w_out) + b_out


if __name__ == "__main__":
    # Small shapes consistent with the module: batch=4, seq=8, dim=32, heads=8.
    batch, seq, dim, heads = 4, 8, 32, 8

    key = jax.random.PRNGKey(0)
    kx, kqkv, kout, kbias = jax.random.split(key, 4)

    x = jax.random.normal(kx, (batch, seq, dim), dtype=jnp.float32)

    # Deterministic parameter init (PyTorch-Linear-style uniform bounds).
    bound = 1.0 / sqrt(dim)
    w_qkv = jax.random.uniform(kqkv, (3 * dim, dim), jnp.float32, -bound, bound)
    w_out = jax.random.uniform(kout, (dim, dim), jnp.float32, -bound, bound)
    b_out = jax.random.uniform(kbias, (dim,), jnp.float32, -bound, bound)

    y = attention_pallas(x, w_qkv, w_out, b_out, heads=heads, batch_tile=2)
    y = jax.block_until_ready(y)

    y_ref = attention_reference(x, w_qkv, w_out, b_out, heads=heads)
    assert y.shape == y_ref.shape
    # bf16 MXU inputs (f32 accumulation) + approximate EUP reciprocal in the
    # softmax => compare against the exact-f32 reference at relaxed tolerance.
    assert jnp.allclose(y, y_ref, atol=2e-2, rtol=2e-2), "Pallas output mismatch vs reference"

    print("KERNEL_OK")
</pallas_src>

<mosaic_0001>
module attributes {stable_mosaic.version = 11 : i64} {
  func.func @_attention_kernel(%arg0: i32, %arg1: i32, %arg2: memref<2x8x32xbf16, #tpu.memory_space<vmem>>, %arg3: memref<1x3x32x4xbf16, #tpu.memory_space<vmem>>, %arg4: memref<1x4x32xbf16, #tpu.memory_space<vmem>>, %arg5: memref<1x32xf32, #tpu.memory_space<vmem>>, %arg6: memref<2x8x32xf32, #tpu.memory_space<vmem>>, %arg7: memref<16x32xf32, #tpu.memory_space<vmem>>) attributes {dimension_semantics = [#tpu.dimension_semantics<parallel>, #tpu.dimension_semantics<arbitrary>], iteration_bounds = array<i64: 2, 8>, scalar_prefetch = 0 : i64, scratch_operands = 1 : i64, tpu.core_type = #tpu.core_type<tc>, window_params = [{transform_indices = @transform_0, window_bounds = array<i64: 2, 8, 32>}, {transform_indices = @transform_1, window_bounds = array<i64: 1, 3, 32, 4>}, {transform_indices = @transform_2, window_bounds = array<i64: 1, 4, 32>}, {pipeline_mode = #tpu.pipeline_mode<synchronous>, transform_indices = @transform_3, window_bounds = array<i64: 1, 32>}, {transform_indices = @transform_4, window_bounds = array<i64: 2, 8, 32>}]} {
    %c0_i32 = arith.constant 0 : i32
    %0 = arith.cmpi eq, %arg1, %c0_i32 : i32
    %1 = arith.extui %0 : i1 to i32
    %c0_i32_0 = arith.constant 0 : i32
    %2 = arith.cmpi ne, %1, %c0_i32_0 : i32
    scf.if %2 {
      %cst_23 = arith.constant 0.000000e+00 : f32
      %48 = vector.broadcast %cst_23 : f32 to vector<16x32xf32>
      %c0_24 = arith.constant 0 : index
      %c0_25 = arith.constant 0 : index
      %49 = vector.load %arg7[%c0_24, %c0_25] : memref<16x32xf32, #tpu.memory_space<vmem>>, vector<16x32xf32>
      tpu.vector_store %arg7[%c0_24, %c0_25], %48 {strides = array<i32>} : memref<16x32xf32, #tpu.memory_space<vmem>>, vector<16x32xf32>,
    } else {
    }
    %c0 = arith.constant 0 : index
    %c0_1 = arith.constant 0 : index
    %c0_2 = arith.constant 0 : index
    %3 = vector.load %arg2[%c0, %c0_1, %c0_2] : memref<2x8x32xbf16, #tpu.memory_space<vmem>>, vector<2x8x32xbf16>
    %4 = vector.shape_cast %3 : vector<2x8x32xbf16> to vector<16x32xbf16>
    %c0_3 = arith.constant 0 : index
    %c0_4 = arith.constant 0 : index
    %c0_5 = arith.constant 0 : index
    %c0_6 = arith.constant 0 : index
    %5 = vector.load %arg3[%c0_3, %c0_4, %c0_5, %c0_6] : memref<1x3x32x4xbf16, #tpu.memory_space<vmem>>, vector<1x3x32x4xbf16>
    %6 = vector.shape_cast %5 : vector<1x3x32x4xbf16> to vector<3x32x4xbf16>
    %c0_7 = arith.constant 0 : index
    %c0_8 = arith.constant 0 : index
    %c0_9 = arith.constant 0 : index
    %7 = vector.load %arg4[%c0_7, %c0_8, %c0_9] : memref<1x4x32xbf16, #tpu.memory_space<vmem>>, vector<1x4x32xbf16>
    %8 = vector.shape_cast %7 : vector<1x4x32xbf16> to vector<4x32xbf16>
    %9 = vector.extract_strided_slice %6 {offsets = [0, 0, 0], sizes = [1, 32, 4], strides = [1, 1, 1]} : vector<3x32x4xbf16> to vector<1x32x4xbf16>
    %10 = vector.shape_cast %9 : vector<1x32x4xbf16> to vector<32x4xbf16>
    %cst = arith.constant dense<0.000000e+00> : vector<16x4xf32>
    %11 = tpu.matmul %4, %10, %cst {dimension_numbers = #tpu.dot_dimension_numbers<[1], [0], [0], [1], [0, 0, 1, 1], [], []>} : vector<16x32xbf16>, vector<32x4xbf16>, vector<16x4xf32> -> vector<16x4xf32>
    %12 = vector.extract_strided_slice %6 {offsets = [1, 0, 0], sizes = [1, 32, 4], strides = [1, 1, 1]} : vector<3x32x4xbf16> to vector<1x32x4xbf16>
    %13 = vector.shape_cast %12 : vector<1x32x4xbf16> to vector<32x4xbf16>
    %cst_10 = arith.constant dense<0.000000e+00> : vector<16x4xf32>
    %14 = tpu.matmul %4, %13, %cst_10 {dimension_numbers = #tpu.dot_dimension_numbers<[1], [0], [0], [1], [0, 0, 1, 1], [], []>} : vector<16x32xbf16>, vector<32x4xbf16>, vector<16x4xf32> -> vector<16x4xf32>
    %15 = vector.extract_strided_slice %6 {offsets = [2, 0, 0], sizes = [1, 32, 4], strides = [1, 1, 1]} : vector<3x32x4xbf16> to vector<1x32x4xbf16>
    %16 = vector.shape_cast %15 : vector<1x32x4xbf16> to vector<32x4xbf16>
    %cst_11 = arith.constant dense<0.000000e+00> : vector<16x4xf32>
    %17 = tpu.matmul %4, %16, %cst_11 {dimension_numbers = #tpu.dot_dimension_numbers<[1], [0], [0], [1], [0, 0, 1, 1], [], []>} : vector<16x32xbf16>, vector<32x4xbf16>, vector<16x4xf32> -> vector<16x4xf32>
    %18 = vector.shape_cast %11 : vector<16x4xf32> to vector<2x8x4xf32>
    %19 = arith.truncf %18 : vector<2x8x4xf32> to vector<2x8x4xbf16>
    %20 = vector.shape_cast %14 : vector<16x4xf32> to vector<2x8x4xf32>
    %21 = arith.truncf %20 : vector<2x8x4xf32> to vector<2x8x4xbf16>
    %22 = vector.shape_cast %17 : vector<16x4xf32> to vector<2x8x4xf32>
    %23 = arith.truncf %22 : vector<2x8x4xf32> to vector<2x8x4xbf16>
    "tpu.trace_start"() <{level = 10 : i32, message = "bqd,bkd->bqk"}> : () -> ()
    %cst_12 = arith.constant dense<0.000000e+00> : vector<2x8x8xf32>
    %24 = tpu.matmul %19, %21, %cst_12 {dimension_numbers = #tpu.dot_dimension_numbers<[2], [2], [1], [1], [0, 0, 0, 1, 1, 1], [0], [0]>} : vector<2x8x4xbf16>, vector<2x8x4xbf16>, vector<2x8x8xf32> -> vector<2x8x8xf32>
    "tpu.trace_stop"() : () -> ()
    %cst_13 = arith.constant 0.176776692 : f32
    %25 = vector.broadcast %cst_13 : f32 to vector<2x8x8xf32>
    %26 = arith.mulf %24, %25 : vector<2x8x8xf32>
    %cst_14 = arith.constant dense<0xFF800000> : vector<2x8xf32>
    %27 = vector.multi_reduction <maximumf>, %26, %cst_14 [2] : vector<2x8x8xf32> to vector<2x8xf32>
    %28 = vector.shape_cast %27 : vector<2x8xf32> to vector<2x8x1xf32>
    %29 = vector.broadcast %28 : vector<2x8x1xf32> to vector<2x8x8xf32>
    %30 = arith.subf %26, %29 : vector<2x8x8xf32>
    %31 = math.exp %30 : vector<2x8x8xf32>
    %cst_15 = arith.constant dense<0.000000e+00> : vector<2x8xf32>
    %32 = vector.multi_reduction <add>, %31, %cst_15 [2] : vector<2x8x8xf32> to vector<2x8xf32>
    %33 = vector.shape_cast %32 : vector<2x8xf32> to vector<2x8x1xf32>
    %34 = tpu.reciprocal %33 {approx = true} : vector<2x8x1xf32> -> vector<2x8x1xf32>
    %35 = vector.broadcast %34 : vector<2x8x1xf32> to vector<2x8x8xf32>
    %36 = arith.mulf %31, %35 : vector<2x8x8xf32>
    %37 = arith.truncf %36 : vector<2x8x8xf32> to vector<2x8x8xbf16>
    "tpu.trace_start"() <{level = 10 : i32, message = "bqk,bkd->bqd"}> : () -> ()
    %cst_16 = arith.constant dense<0.000000e+00> : vector<2x8x4xf32>
    %38 = tpu.matmul %37, %23, %cst_16 {dimension_numbers = #tpu.dot_dimension_numbers<[2], [1], [1], [2], [0, 0, 0, 1, 1, 2], [0], [0]>} : vector<2x8x8xbf16>, vector<2x8x4xbf16>, vector<2x8x4xf32> -> vector<2x8x4xf32>
    "tpu.trace_stop"() : () -> ()
    %39 = vector.shape_cast %38 : vector<2x8x4xf32> to vector<16x4xf32>
    %40 = arith.truncf %39 : vector<16x4xf32> to vector<16x4xbf16>
    %c0_17 = arith.constant 0 : index
    %c0_18 = arith.constant 0 : index
    %41 = vector.load %arg7[%c0_17, %c0_18] : memref<16x32xf32, #tpu.memory_space<vmem>>, vector<16x32xf32>
    %cst_19 = arith.constant dense<0.000000e+00> : vector<16x32xf32>
    %42 = tpu.matmul %40, %8, %cst_19 {dimension_numbers = #tpu.dot_dimension_numbers<[1], [0], [0], [1], [0, 0, 1, 1], [], []>} : vector<16x4xbf16>, vector<4x32xbf16>, vector<16x32xf32> -> vector<16x32xf32>
    %43 = arith.addf %41, %42 : vector<16x32xf32>
    %c0_20 = arith.constant 0 : index
    %c0_21 = arith.constant 0 : index
    %44 = vector.load %arg7[%c0_20, %c0_21] : memref<16x32xf32, #tpu.memory_space<vmem>>, vector<16x32xf32>
    tpu.vector_store %arg7[%c0_20, %c0_21], %43 {strides = array<i32>} : memref<16x32xf32, #tpu.memory_space<vmem>>, vector<16x32xf32>,
    %c7_i32 = arith.constant 7 : i32
    %45 = arith.cmpi eq, %arg1, %c7_i32 : i32
    %46 = arith.extui %45 : i1 to i32
    %c0_i32_22 = arith.constant 0 : i32
    %47 = arith.cmpi ne, %46, %c0_i32_22 : i32
    scf.if %47 {
      %c0_23 = arith.constant 0 : index
      %c0_24 = arith.constant 0 : index
      %48 = vector.load %arg7[%c0_23, %c0_24] : memref<16x32xf32, #tpu.memory_space<vmem>>, vector<16x32xf32>
      %c0_25 = arith.constant 0 : index
      %c0_26 = arith.constant 0 : index
      %49 = vector.load %arg5[%c0_25, %c0_26] : memref<1x32xf32, #tpu.memory_space<vmem>>, vector<1x32xf32>
      %50 = vector.broadcast %49 : vector<1x32xf32> to vector<16x32xf32>
      %51 = arith.addf %48, %50 : vector<16x32xf32>
      %52 = vector.shape_cast %51 : vector<16x32xf32> to vector<2x8x32xf32>
      %c0_27 = arith.constant 0 : index
      %c0_28 = arith.constant 0 : index
      %c0_29 = arith.constant 0 : index
      %53 = vector.load %arg6[%c0_27, %c0_28, %c0_29] : memref<2x8x32xf32, #tpu.memory_space<vmem>>, vector<2x8x32xf32>
      tpu.vector_store %arg6[%c0_27, %c0_28, %c0_29], %52 {strides = array<i32>} : memref<2x8x32xf32, #tpu.memory_space<vmem>>, vector<2x8x32xf32>,
    } else {
    }
    return
  }
  func.func @transform_0(%arg0: i32, %arg1: i32) -> (i32, i32, i32) {
    %c0_i32 = arith.constant 0 : i32
    %c0_i32_0 = arith.constant 0 : i32
    %c0_i32_1 = arith.constant 0 : i32
    return %arg0, %c0_i32, %c0_i32_0 : i32, i32, i32
  }
  func.func @transform_1(%arg0: i32, %arg1: i32) -> (i32, i32, i32, i32) {
    %c0_i32 = arith.constant 0 : i32
    %c0_i32_0 = arith.constant 0 : i32
    %c0_i32_1 = arith.constant 0 : i32
    %c0_i32_2 = arith.constant 0 : i32
    return %arg1, %c0_i32, %c0_i32_0, %c0_i32_1 : i32, i32, i32, i32
  }
  func.func @transform_2(%arg0: i32, %arg1: i32) -> (i32, i32, i32) {
    %c0_i32 = arith.constant 0 : i32
    %c0_i32_0 = arith.constant 0 : i32
    %c0_i32_1 = arith.constant 0 : i32
    return %arg1, %c0_i32, %c0_i32_0 : i32, i32, i32
  }
  func.func @transform_3(%arg0: i32, %arg1: i32) -> (i32, i32) {
    %c0_i32 = arith.constant 0 : i32
    %c0_i32_0 = arith.constant 0 : i32
    %c0_i32_1 = arith.constant 0 : i32
    return %c0_i32, %c0_i32_0 : i32, i32
  }
  func.func @transform_4(%arg0: i32, %arg1: i32) -> (i32, i32, i32) {
    %c0_i32 = arith.constant 0 : i32
    %c0_i32_0 = arith.constant 0 : i32
    %c0_i32_1 = arith.constant 0 : i32
    return %arg0, %c0_i32, %c0_i32_0 : i32, i32, i32
  }
}

</mosaic_0001>

<bundles_post_ra>
// kernel: tpu_custom_call.1
= control target key start
LH: loop header
LB: loop body
LE: loop exit
PB: predicated region body
PF: predicated region fallthrough
CT: control target
= control target key end

     0   :  { %s1950_s0 = inlined_call_operand.hbm [shape: bf16[4,8,32], index: 0, kind: input, shape index: {}]   ;;  %s1951_s1 = inlined_call_operand.hbm [shape: bf16[8,3,32,4], index: 1, kind: input, shape index: {}]   ;;  %s1952_s2 = inlined_call_operand.hbm [shape: bf16[8,4,32], index: 2, kind: input, shape index: {}]   ;;  %s1953_s3 = inlined_call_operand.hbm [shape: f32[1,32], index: 3, kind: input, shape index: {}]   ;;  %s1954_s4 = inlined_call_operand.hbm [shape: f32[4,8,32], index: 4, kind: output, shape index: {}]  }
   0x1   :  { %1974 = sst [smem:[#allocation22_spill]] %s1951_s1 }
   0x2   :  { %1975 = sst [smem:[#allocation23_spill]] %s1953_s3 }
   0x3   :  { %1976 = sst [smem:[#allocation24_spill]] %s1954_s4 }
   0x4   :  { %9 = vsyncpa [#allocation4], 0 }
   0x5   :  { %11 = vsyncpa [#allocation4 + $0x1], 0 }
   0x6   :  { %12 = vsyncpa [#allocation7], 0 }
   0x7   :  { %14 = vsyncpa [#allocation7 + $0x1], 0 }
   0x8   :  { %15 = vsyncpa [#allocation10], 0 }
   0x9   :  { %16 = vsyncpa [#allocation5], 0 }
   0xa   :  { %18 = vsyncpa [#allocation5 + $0x1], 0  ;;  %s1499_s15 = smov 0   ;;  %s1501_s16 = smov 0  }
   0xb   :  { %s1503_s17 = smov 0   ;;  %s1505_s18 = smov 0  }
   0xc   :  { %s1507_s19 = smov 0   ;;  %s1509_s20 = smov 0  }
   0xd   :  { %s1511_s21 = smov 0   ;;  %s1513_s22 = smov 0  }
   0xe   :  { %s1515_s23 = smov 0   ;;  %s1517_s24 = smov 0  }
   0xf   :  { %s1519_s25 = smov 0  }
  0x10 LB: > { %1977 = sst [smem:[#allocation16_spill]] %s1432_s18  ;;  %s33_s26 = sadd.s32 1, %s1452_s23  ;;  %s1460_s25 = sphi %s1519_s25, %s24_s25   ;;  %s1456_s24 = sphi %s1517_s24, %s2030_s24   ;;  %s1452_s23 = sphi %s1515_s23, %s2029_s23   ;;  %s1448_s22 = sphi %s1513_s22, %s2019_s22   ;;  %s1444_s21 = sphi %s1511_s21, %s2028_s21   ;;  %s1440_s20 = sphi %s1509_s20, %s2027_s20   ;;  %s1436_s19 = sphi %s1507_s19, %s2026_s19   ;;  %s1432_s18 = sphi %s1505_s18, %s2025_s18   ;;  %s1428_s17 = sphi %s1503_s17, %s2024_s17   ;;  %s1424_s16 = sphi %s1501_s16, %s2023_s16   ;;  %s1420_s15 = sphi %s1499_s15, %s2022_s15  }
  0x11   : > { %1978 = sst [smem:[#allocation17_spill]] %s1456_s24  ;;  %p1958_p0 = scmp.eq.s32.totalorder %s1460_s25, 0 }
  0x12   : > { %p1556_p1 = scmp.ge.s32.totalorder %s33_s26, 8  ;;  %s69_s28 = sadd.s32 1, %s1428_s17 }
  0x13   : > { %p76_p2 = scmp.ne.s32.totalorder %s1428_s17, %s1424_s16  ;;  %p1957_p4 = scmp.lt.s32.totalorder %s1460_s25, 16 }
  0x14   : > { %s2032_s26 = smov (%p1556_p1, %s33_s26), 0  ;;  %s211_s30 = sand.u32 1, %s1460_s25  }
  0x15   : > { %1980 = sst [smem:[#allocation18_spill]] %s2032_s26  ;;  %p78_p3 = por %p76_p2, %p1958_p0 }
  0x16   : > { %s66_s29 = ssub.s32 %s1452_s23, %s2032_s26  ;;  %s1955_s5 = sand.u32 1, %s1428_s17  }
  0x17   : > { %p67_p5 = scmp.eq.s32.totalorder %s66_s29, 0  ;;  %s1064_s7 = smul.u32 48, %s1955_s5 }
  0x18   : > { %s1065_s8 = smul.u32 768, %s1452_s23  ;;  %p1582_p6 = pnand %p1957_p4, %p78_p3 }
  0x19   : > { %s1575_s6 = scalar_select %p67_p5, %s1428_s17, %s69_s28  }
  0x1a   : > { %s1982_s9 = scalar_select %p1582_p6, 1, 0 }
  0x1b   : > { %1981 = sst [smem:[#allocation19_spill]] %s1575_s6  ;;  %s1983_s1 = sld [smem:[#allocation22_spill]] }
  0x1c   : > { %s215_s13 = scalar_lea.vmem [#allocation6], %s1064_s7  ;;  %s1593_s28 = scalar_lea.sflag [#allocation7], %s211_s30 }
  0x1d   : > { %s222_s14 = sshll.u32 %s215_s13, 4  ;;  %p1959_p8 = pneg %p1582_p6  ;;  %s1591_s14 = int_to_ptr.vmem [resolvable:$true] %s222_s14 }
  0x21   : > { %s1589_s12 = scalar_lea.hbm %s1983_s1, %s1065_s8  ;;  %s1217_s11 = scalar_lea.hbm %s1983_s1, 6144 }
  0x22   : > { %s1212_s29 = scalar_lea.hbm %s1589_s12, 768  ;;  %p1218_p11 = scmp.lt.u32.totalorder %s1589_s12, %s1983_s1 }
  0x23   : > { %p1213_p7 = scmp.ne.s32.totalorder %s1589_s12, %s1212_s29  ;;  %p1219_p12 = scmp.lt.u32.totalorder %s1217_s11, %s1212_s29 }
  0x24   : > { %p1221_p2 = scmp.lt.u32.totalorder %s1212_s29, %s1589_s12 }
  0x25   : > { %p1215_p9 = pnand %p1959_p8, %p1213_p7  ;;  %p1220_p13 = por %p1219_p12, %p1218_p11 }
  0x27   : > { %p1216_p10 = pneg %p1215_p9  ;;  %p1222_p3 = por %p1221_p2, %p1220_p13 }
  0x29   : > { %p1223_p5 = pnand %p1222_p3, %p1216_p10 }
  0x2b   : > { %1226 = shalt.err (!%p1223_p5)
}
  0x2c   : > { %s1227_s30 = scalar_lea.vmem %s1591_s14, 768  ;;  %s1462_s7 = smov [#allocation6]  }
  0x2d   : > { %p1228_p7 = scmp.ne.s32.totalorder %s1591_s14, %s1227_s30  ;;  %s1232_s13 = sshll.u32 %s1462_s7, 4  ;;  %s1233_s13 = int_to_ptr.vmem [resolvable:$false] %s1232_s13 }
  0x2e   : > { %s1234_s26 = scalar_lea.vmem %s1233_s13, 1536  ;;  %p1235_p0 = scmp.lt.s32.totalorder %s1591_s14, %s1233_s13 }
  0x2f   : > { %p1230_p9 = pnand %p1228_p7, %p1959_p8  ;;  %p1236_p11 = scmp.lt.s32.totalorder %s1234_s26, %s1227_s30 }
  0x31   : > { %p1231_p4 = pneg %p1230_p9  ;;  %p1237_p12 = por %p1236_p11, %p1235_p0 }
  0x33   : > { %p1238_p13 = pnand %p1237_p12, %p1231_p4 }
  0x35   : > { %1241 = shalt.err (!%p1238_p13)
}
  0x36   : > { %s1962_s5 = smov 64   ;;  %s1963_s29 = smov 4  }
  0x37   : > { %1089 = dma.hbm_to_vmem [thread:$0]  (!%p1582_p6), %s1589_s12, 768, %s1591_s14, %s1593_s28, %s1962_s5, %s1962_s5, %s1963_s29  }
  0x38   : > { %s1625_s8 = sadd.s32 4294967295, %s1460_s25   ;;  %s951_s10 = sadd.s32 4294967294, %s1460_s25  }
  0x39   : > { %p50_p0 = scmp.ne.s32.totalorder %s1440_s20, %s1436_s19  ;;  %p56_p4 = scmp.ne.s32.totalorder %s1436_s19, %s1432_s18 }
  0x3a   : > { %p1967_p10 = scmp.eq.s32.totalorder %s1625_s8, 0  ;;  %p82_p2 = scmp.ne.s32.totalorder %s1424_s16, %s1420_s15 }
  0x3b   : > { %p1984_p3 = scmp.eq.s32.totalorder %s1460_s25, 0  ;;  %p153_p7 = scmp.eq.s32.totalorder %s1625_s8, 15 }
  0x3c   : > { %p1645_p9 = por %p1967_p10, %p56_p4  ;;  %p1651_p11 = por %p82_p2, %p1967_p10 }
  0x3d   : > { %p1638_p5 = por %p1984_p3, %p50_p0  ;;  %p1655_p12 = por %p153_p7, %p50_p0 }
  0x3e   : > { %s1986_s12 = scalar_select %p1645_p9, 1, 0 }
  0x3f   : > { %s1985_s30 = scalar_select %p1638_p5, 1, 0 }
  0x40   : > { %s1987_s14 = scalar_select %p1651_p11, 1, 0 }
  0x41   : > { %s1988_s15 = scalar_select %p1655_p12, 1, 0 }
  0x42   : > { %p159_p13 = scmp.eq.s32.totalorder %s951_s10, 15  ;;  %p952_p3 = scmp.ge.s32.totalorder %s1460_s25, 1 }
  0x43   : > { %p166_p8 = scmp.lt.s32.totalorder %s1460_s25, 17  ;;  %s1465_s26 = smov [#allocation9]  }
  0x44   : > { %p1661_p6 = por %p159_p13, %p56_p4  ;;  %s179_s5 = sshll.u32 %s1465_s26, 4  ;;  %s180_s5 = int_to_ptr.vmem [resolvable:$true] %s179_s5 }
  0x45   : > { %p1665_p5 = pnand %p952_p3, %p166_p8  ;;  %s36_s11 = sadd.s32 1, %s1456_s24 }
  0x46   : > { %s1989_s7 = scalar_select %p1661_p6, 1, 0 }
  0x47   : > { %s1991_s13 = scalar_select %p1665_p5, 1, 0 }
  0x48   : > { %1990 = sst [smem:[#allocation20_spill]] %s1989_s7  ;;  %p1079_p2 = pneg %p1665_p5 }
  0x49   : > { %s2034_s11 = smov (!%p1556_p1, %s36_s11), %s1456_s24  ;;  %s1993_s3 = sld [smem:[#allocation23_spill]] }
  0x4a   : > { %p1674_p0 = pnand %p1079_p2, %p1967_p10 }
  0x4c   : > { %p1244_p4 = pneg %p1674_p0 }
  0x4f   : > { %s1242_s7 = scalar_lea.hbm %s1993_s3, 16 }
  0x50   : > { %p1243_p8 = scmp.ne.s32.totalorder %s1993_s3, %s1242_s7  ;;  %p1249_p3 = scmp.lt.u32.totalorder %s1242_s7, %s1993_s3 }
  0x52   : > { %p1245_p7 = pnand %p1244_p4, %p1243_p8 }
  0x54   : > { %p1246_p13 = pneg %p1245_p7 }
  0x56   : > { %p1251_p2 = pnand %p1249_p3, %p1246_p13 }
  0x58   : > { %1254 = shalt.err (!%p1251_p2)
}
  0x59   : > { %s1255_s27 = scalar_lea.vmem %s180_s5, 16  ;;  %s1262_s1 = scalar_lea.vmem %s180_s5, 32 }
  0x5a   : > { %p1256_p1 = scmp.ne.s32.totalorder %s180_s5, %s1255_s27  ;;  %p1263_p12 = scmp.lt.s32.totalorder %s180_s5, %s180_s5 }
  0x5b   : > { %p1264_p11 = scmp.lt.s32.totalorder %s1262_s1, %s1255_s27 }
  0x5c   : > { %p1258_p10 = pnand %p1256_p1, %p1244_p4 }
  0x5d   : > { %p1265_p9 = por %p1264_p11, %p1263_p12 }
  0x5e   : > { %p1259_p6 = pneg %p1258_p10 }
  0x60   : > { %p1266_p5 = pnand %p1265_p9, %p1259_p6 }
  0x62   : > { %1269 = shalt.err (!%p1266_p5)
}
  0x63   : > { %1082 = dma.hbm_to_vmem [thread:$0]  (!%p1674_p0), %s1993_s3, 16, %s180_s5, [#allocation10]  }
  0x64   : > { %p38_p10 = scmp.ge.s32.totalorder %s2034_s11, 2  ;;  %s1994_s6 = sand.u32 1, %s1440_s20  }
  0x65   : > { %s955_s29 = sshll.u32 %s1994_s6, 3  ;;  %s989_s7 = sshll.u32 %s1456_s24, 7 }
  0x66   : > { %s2036_s11 = smov (%p38_p10, %s2034_s11), 0  ;;  %s1706_s27 = scalar_lea.hbm %s1950_s0, %s989_s7 }
  0x67   : > { %1995 = sst [smem:[#allocation21_spill]] %s2036_s11  ;;  %s194_s1 = scalar_lea.vmem [#allocation3], %s955_s29 }
  0x68   : > { %s201_s4 = sshll.u32 %s194_s1, 4  ;;  %s40_s18 = ssub.s32 %s1456_s24, %s2036_s11  ;;  %s1710_s4 = int_to_ptr.vmem [resolvable:$true] %s201_s4 }
  0x69   : > { %p41_p6 = scmp.eq.s32.totalorder %s40_s18, 0  ;;  %p1996_p5 = scmp.ne.s32.totalorder %s1985_s30, 0 }
  0x6a   : > { %p1997_p9 = scmp.lt.s32.totalorder %s1460_s25, 16  ;;  %s1999_s6 = sand.u32 1, %s1428_s17  }
  0x6b   : > { %s1722_s7 = sshll.u32 %s1999_s6, 1  ;;  %s2000_s29 = sadd.s32 1, %s1440_s20 }
  0x6c   : > { %p1716_p11 = pnand %p1997_p9, %p1996_p5  ;;  %s2001_s1 = sand.u32 1, %s1440_s20  }
  0x6d   : > { %s1728_s26 = scalar_select %p41_p6, %s1440_s20, %s2000_s29  }
  0x6e   : > { %s1732_s3 = scalar_lea.sflag [#allocation4], %s2001_s1  ;;  %s1270_s11 = scalar_lea.hbm %s1706_s27, 128 }
  0x6f   : > { %p1271_p12 = scmp.ne.s32.totalorder %s1706_s27, %s1270_s11  ;;  %p1272_p0 = pneg %p1716_p11 }
  0x70   : > { %s1275_s6 = scalar_lea.hbm %s1950_s0, 256  ;;  %p1276_p7 = scmp.lt.u32.totalorder %s1706_s27, %s1950_s0 }
  0x71   : > { %p1273_p8 = pnand %p1272_p0, %p1271_p12  ;;  %p1277_p13 = scmp.lt.u32.totalorder %s1275_s6, %s1270_s11 }
  0x72   : > { %p1279_p2 = scmp.lt.u32.totalorder %s1270_s11, %s1706_s27 }
  0x73   : > { %p1274_p4 = pneg %p1273_p8  ;;  %p1278_p3 = por %p1277_p13, %p1276_p7 }
  0x75   : > { %p1280_p1 = por %p1279_p2, %p1278_p3 }
  0x77   : > { %p1281_p10 = pnand %p1280_p1, %p1274_p4 }
  0x79   : > { %1284 = shalt.err (!%p1281_p10)
}
  0x7a   : > { %s1285_s29 = scalar_lea.vmem %s1710_s4, 128  ;;  %s1466_s1 = smov [#allocation3]  }
  0x7b   : > { %p1286_p6 = scmp.ne.s32.totalorder %s1710_s4, %s1285_s29  ;;  %s1290_s30 = sshll.u32 %s1466_s1, 4  ;;  %s1291_s30 = int_to_ptr.vmem [resolvable:$false] %s1290_s30 }
  0x7c   : > { %s1292_s24 = scalar_lea.vmem %s1291_s30, 256  ;;  %p1293_p12 = scmp.lt.s32.totalorder %s1710_s4, %s1291_s30 }
  0x7d   : > { %p1288_p5 = pnand %p1286_p6, %p1272_p0  ;;  %p1294_p8 = scmp.lt.s32.totalorder %s1292_s24, %s1285_s29 }
  0x7f   : > { %p1289_p9 = pneg %p1288_p5  ;;  %p1295_p7 = por %p1294_p8, %p1293_p12 }
  0x81   : > { %p1296_p13 = pnand %p1295_p7, %p1289_p9 }
  0x83   : > { %1299 = shalt.err (!%p1296_p13)
}
  0x84   : > { %s2002_s11 = smov 4   ;;  %s2003_s10 = smov 64  }
  0x85   : > { %1086 = dma.hbm_to_vmem [thread:$0]  (!%p1716_p11), %s1706_s27, 128, %s1710_s4, %s1732_s3, %s2003_s10, %s2003_s10, %s2002_s11  }
  0x86   : > { %s2004_s18 = sshll.u32 %s1452_s23, 5  ;;  %s236_s5 = scalar_lea.vmem [#allocation8], %s1722_s7 }
  0x87   : > { %s1768_s29 = scalar_lea.hbm %s1952_s2, %s2004_s18  ;;  %s243_s30 = sshll.u32 %s236_s5, 4  ;;  %s244_s30 = int_to_ptr.vmem [resolvable:$true] %s243_s30 }
  0x88   : > { %s1300_s24 = scalar_lea.hbm %s1768_s29, 32  ;;  %p2005_p4 = scmp.ne.s32.totalorder %s1982_s9, 0 }
  0x89   : > { %p1301_p0 = scmp.ne.s32.totalorder %s1768_s29, %s1300_s24  ;;  %s1305_s4 = scalar_lea.hbm %s1952_s2, 256 }
  0x8a   : > { %p2006_p3 = pneg %p2005_p4  ;;  %p1306_p11 = scmp.lt.u32.totalorder %s1768_s29, %s1952_s2 }
  0x8b   : > { %p1307_p10 = scmp.lt.u32.totalorder %s1305_s4, %s1300_s24  ;;  %p1309_p5 = scmp.lt.u32.totalorder %s1300_s24, %s1768_s29 }
  0x8c   : > { %p1303_p2 = pnand %p1301_p0, %p2006_p3 }
  0x8d   : > { %p1308_p6 = por %p1307_p10, %p1306_p11 }
  0x8e   : > { %p1304_p1 = pneg %p1303_p2 }
  0x8f   : > { %p1310_p9 = por %p1309_p5, %p1308_p6 }
  0x91   : > { %p1311_p12 = pnand %p1310_p9, %p1304_p1 }
  0x93   : > { %1314 = shalt.err (!%p1311_p12)
}
  0x94   : > { %s1315_s7 = scalar_lea.vmem %s244_s30, 32  ;;  %p2007_p7 = pmov %p2006_p3 }
  0x95   : > { %p1316_p8 = scmp.ne.s32.totalorder %s244_s30, %s1315_s7  ;;  %s1467_s18 = smov [#allocation8]  }
  0x96   : > { %s1320_s6 = sshll.u32 %s1467_s18, 4  ;;  %s1321_s6 = int_to_ptr.vmem [resolvable:$false] %s1320_s6 }
  0x97   : > { %p1318_p13 = pnand %p1316_p8, %p2007_p7  ;;  %s1322_s1 = scalar_lea.vmem %s1321_s6, 64 }
  0x98   : > { %p1323_p3 = scmp.lt.s32.totalorder %s244_s30, %s1321_s6  ;;  %p1324_p2 = scmp.lt.s32.totalorder %s1322_s1, %s1315_s7 }
  0x99   : > { %p1319_p0 = pneg %p1318_p13 }
  0x9a   : > { %p1325_p10 = por %p1324_p2, %p1323_p3 }
  0x9c   : > { %p1326_p11 = pnand %p1325_p10, %p1319_p0 }
  0x9e   : > { %1329 = shalt.err (!%p1326_p11)
}
  0x9f   : > { %1092 = dma.hbm_to_vmem [thread:$0]  (!%p2005_p4), %s1768_s29, 32, %s244_s30, %s1593_s28  }
  0xa0   : > { %p2008_p1 = scmp.ne.s32.totalorder %s1991_s13, 0 }
  0xa1   : > { %s1794_s5 = sand.u32 (!%p2008_p1), 1, %s1436_s19   ;;  %p2009_p6 = scmp.ne.s32.totalorder (!%p2008_p1), %s1986_s12, 0 }
  0xa2   : > { %252 = sbr.rel (%p2008_p1) target bundleno = 1420 (0x58c), region = 36  ;;  %s962_s24 = sshll.u32 (!%p2008_p1), %s1794_s5, 3 }
  0xa3   : > { %s255_s3 = scalar_lea.sflag (!%p2008_p1), [#allocation4], %s1794_s5  ;;  %s1798_s27 = scalar_lea.vmem (!%p2008_p1), [#allocation3], %s962_s24 }
  0xa9   : > { %1403 = dma.done.wait (%p2009_p6), %s255_s3, 128  }
  0xaa   : > { %1405 = vsyncadd (%p2009_p6), %s255_s3, 4294967168  ;;  %s263_s9 = sand.u32 1, %s1625_s8   ;;  %s265_s28 = sand.u32 1, %s1424_s16  }
  0xab   : > { %s1066_s13 = smul.u32 48, %s265_s28  ;;  %s264_s29 = scalar_lea.sflag [#allocation7], %s263_s9 }
  0xac   : > { %p2010_p4 = scmp.ne.s32.totalorder %s1987_s14, 0 }
  0xad   : > { %s1806_s30 = scalar_lea.vmem [#allocation6], %s1066_s13 }
  0xae   : > { %1407 = dma.done.wait (%p2010_p4), %s264_s29, 800  }
  0xaf   : > { %1409 = vsyncadd (%p2010_p4), %s264_s29, 4294966496  ;;  %s1812_s4 = sshll.u32 %s265_s28, 1  ;;  %p2011_p5 = scmp.eq.s32.totalorder %s1625_s8, 0 }
  0xb0   : > { %s276_s12 = scalar_lea.vmem [#allocation8], %s1812_s4 }
  0xb1   : > { %1411 = dma.done.wait (%p2011_p5), [#allocation10], 16   ;;  %p2012_p9 = pmov %p2011_p5 }
  0xb2   : > { %s965_s11 = sshll.u32 %s1794_s5, 4  ;;  %p966_p12 = scmp.ne.s32.totalorder %s1444_s21, 0 }
  0xb3   : > { %1413 = vsyncadd (%p2012_p9), [#allocation10], 4294967280  ;;  %s1820_s10 = scalar_lea.vmem [#allocation11], %s965_s11  ;;  %vm322_vm0 = vcmask (!%p966_p12), 261120   ;;  %v1468_v0 = vmov (!%p966_p12), 0.0  }
  0xb4   : > { %321 = sbr.rel (%p966_p12) target bundleno = 187 (0xbb), region = 56  ;;  %323 = vst.msk [vmem:[#allocation2] sm:$0xff] (!%p966_p12), %vm322_vm0, %v1468_v0  ;;  %324 = vst.msk [vmem:[#allocation2 + $0x8] sm:$0xff] (!%p966_p12), %vm322_vm0, %v1468_v0 }
  0xbb PF: > { %v1197_v1 = vld [vmem:[%s1806_s30 + $0x10] sm:$0xff]   ;;  %v1469_v2 = vmov 0.0   ;;  %v1198_v3 = vld [vmem:[%s1806_s30 + $0x18] sm:$0xff]   ;;  %v1199_v4 = vld [vmem:[%s1806_s30] sm:$0xff]   ;;  %vm1470_vm1 = vmmov 0   ;;  %vm357_vm2 = vcmask 261120  }
  0xbc   : > { %1018 = vmatprep.subr.bf16.mxu1 %v1469_v2  ;;  %1010 = vmatprep.subr.bf16.mxu0 %v1469_v2  ;;  %v1201_v5 = vld [vmem:[%s1806_s30 + $0x8] sm:$0xff]   ;;  %v1202_v7 = vld [vmem:[%s1806_s30 + $0x20] sm:$0xff]   ;;  %vm514_vm3 = vcmask 31744   ;;  %vm637_vm4 = vcmask 1043456   ;;  %vm609_vm5 = vcmask 64512   ;;  %vm733_vm6 = vcmask 1041408  }
  0xbd   : > { %1019 = vmatpush3.bf16.msra.mxu1 %v1197_v1  ;;  %1022 = vmatprep.mubr.msk.bf16.mxu1 %vm1470_vm1, %v1469_v2  ;;  %v1200_v6 = vld [vmem:[%s1798_s27] sm:$0xff]   ;;  %v339_v61 = vld [vmem:[%s276_s12] sm:$0x3]  ;;  %p982_p8 = scmp.ne.s32.totalorder %s1444_s21, 7 }
  0xbe   : > { %1020 = vmatprep.subr.bf16.mxu1 %v1469_v2  ;;  %1014 = vmatprep.mubr.msk.bf16.mxu0 %vm1470_vm1, %v1469_v2  ;;  %v1203_v8 = vld [vmem:[%s1806_s30 + $0x28] sm:$0xff]   ;;  %v735_v62 = vsel %vm733_vm6, %v339_v61, 0 }
  0xbf   : > { %1011 = vmatpush3.bf16.msra.mxu0 %v1199_v4 }
  0xc0   : > { %1012 = vmatprep.subr.bf16.mxu0 %v1469_v2 }
  0xc1   : > { %1021 = vmatpush3.bf16.msra.mxu1 %v1198_v3 }
  0xc2   : > { %1034 = vmatprep.subr.bf16.mxu1 %v1469_v2 }
  0xc3   : > { %1013 = vmatpush3.bf16.msra.mxu0 %v1201_v5 }
  0xc4   : > { %1023 = vmatmul.mubr.msk.bf16.vlgmr.msra.gmra.mrb[0].mxu1 %vm357_vm2, %v1200_v6  ;;  %1026 = vmatprep.subr.bf16.mxu0 %v1469_v2 }
  0xc5   : > { %1036 = vmatprep.mubr.msk.bf16.mxu1 %vm1470_vm1, %v1469_v2 }
  0xc6   : > { %1015 = vmatmul.mubr.msk.bf16.vlgmr.msra.gmra.mrb[0].mxu0 %vm357_vm2, %v1200_v6 }
  0xc7   : > { %1027 = vmatpush3.bf16.msra.mxu0 %v1202_v7  ;;  %1030 = vmatprep.mubr.msk.bf16.mxu0 %vm1470_vm1, %v1469_v2 }
  0xc8   : > { %1028 = vmatprep.subr.bf16.mxu0 %v1469_v2 }
  0xcb   : > { %1029 = vmatpush3.bf16.msra.mxu0 %v1203_v8 }
  0xcc   : > { %1040 = vmatprep.subr.bf16.mxu0 %v1469_v2 }
  0xce   : > { %1031 = vmatmul.mubr.msk.bf16.vlgmr.msra.gmra.mrb[4].mxu0 %vm357_vm2, %v1200_v6 }
  0xcf   : > { %1042 = vmatprep.mubr.msk.bf16.mxu0 %vm1470_vm1, %v1469_v2 }
 0x197   : > { %v448_v9 = vpop.f32.mrb[0].mxu1 }
 0x198   : > { %v510_v10 = vpack.c.bf16 %v448_v9, %v448_v9  ;;  %v1024_v11 = vpop.f32.mrb[1].mxu1 }
 0x199   : > { %v451_v12 = vpop.f32.mrb[2].mxu1  ;;  %v395_v13 = vpop.f32.mrb[0].mxu0 }
 0x19a   : > { %v519_v14 = vsel %vm514_vm3, %v510_v10, 0  ;;  %v511_v15 = vpack.c.bf16 %v451_v12, %v451_v12  ;;  %v1025_v16 = vpop.f32.mrb[3].mxu1  ;;  %v1016_v17 = vpop.f32.mrb[1].mxu0  ;;  %v508_v21 = vpack.c.bf16 %v395_v13, %v395_v13  ;;  %v729_v10 = vld [vmem:[#allocation2 + $0x8] sm:$0xff] }
 0x19b   : > { %1035 = vmatpush3.bf16.xpose.msra.mxu1 %v519_v14  ;;  %v398_v18 = vpop.f32.mrb[2].mxu0  ;;  %v983_v17 = vld [vmem:[#allocation9] ss:$0 sm:$0xff] (!%p982_p8) }
 0x19c   : > { %v565_v19 = vsel %vm514_vm3, %v511_v15, 0  ;;  %v1017_v20 = vpop.f32.mrb[3].mxu0  ;;  %1046 = vmatprep.subr.bf16.mxu1 %v1469_v2  ;;  %v509_v23 = vpack.c.bf16 %v398_v18, %v398_v18 }
 0x19d   : > { %1041 = vmatpush3.bf16.xpose.msra.mxu0 %v565_v19 }
 0x19e   : > { %1052 = vmatprep.subr.bf16.mxu0 %v1469_v2 }
 0x1a1   : > { %v501_v22 = vpop.f32.mrb[4].mxu0 }
 0x1a2   : > { %1037 = vmatmul.mubr.msk.bf16.vlgmr.msra.gmra.mrb[4].mxu1 %vm514_vm3, %v508_v21  ;;  %v512_v24 = vpack.c.bf16 %v501_v22, %v501_v22  ;;  %v1032_v25 = vpop.f32.mrb[5].mxu0 }
 0x1a3   : > { %v504_v26 = vpop.f32.mrb[6].mxu0  ;;  %1048 = vmatprep.mubr.msk.bf16.mxu1 %vm1470_vm1, %v1469_v2 }
 0x1a4   : > { %1043 = vmatmul.mubr.msk.bf16.vlgmr.msra.gmra.mrb[8].mxu0 %vm514_vm3, %v509_v23  ;;  %v639_v27 = vsel %vm637_vm4, %v512_v24, 0  ;;  %v513_v28 = vpack.c.bf16 %v504_v26, %v504_v26  ;;  %v1033_v29 = vpop.f32.mrb[7].mxu0 }
 0x1a5   : > { %1047 = vmatpush3.bf16.msra.mxu1 %v639_v27  ;;  %1054 = vmatprep.mubr.msk.bf16.mxu0 %vm1470_vm1, %v1469_v2 }
 0x1a6   : > { %v685_v30 = vsel %vm637_vm4, %v513_v28, 0  ;;  %1058 = vmatprep.subr.bf16.mxu1 %v1469_v2 }
 0x1a7   : > { %1053 = vmatpush3.bf16.msra.mxu0 %v685_v30 }
 0x275   : > { %v555_v31 = vpop.f32.mrb[4].mxu1 }
 0x276   : > { %v607_v32 = vmul.f32 0.17677669, %v555_v31  ;;  %v1038_v33 = vpop.f32.mrb[5].mxu1 }
 0x277   : > { %v558_v34 = vpop.f32.mrb[6].mxu1  ;;  %v601_v35 = vpop.f32.mrb[8].mxu0 }
 0x278   : > { %v608_v36 = vmul.f32 0.17677669, %v601_v35  ;;  %v1039_v37 = vpop.f32.mrb[7].mxu1  ;;  %v1044_v38 = vpop.f32.mrb[9].mxu0  ;;  %v610_v39 = vsel %vm609_vm5, %v607_v32, -inf }
 0x279   : > { %611 = vmax.xlane.f32.xlu0 %v610_v39  ;;  %v604_v40 = vpop.f32.mrb[10].mxu0 }
 0x27a   : > { %v1045_v41 = vpop.f32.mrb[11].mxu0  ;;  %v613_v42 = vsel %vm609_vm5, %v608_v36, -inf }
 0x27d   : > { %614 = vmax.xlane.f32.xlu0 %v613_v42 }
 0x306   : > { %v612_v43 = vpop.xlane.xlu0 %611 }
 0x307   : > { %v616_v44 = vsub.f32 %v607_v32, %v612_v43 }
 0x309   : > { %v618_v45 = vmul.f32 1.442695, %v616_v44 }
 0x30a   : > { %v615_v46 = vpop.xlane.xlu0 %614 }
 0x30b   : > { %1204 = vpow2.f32 %v618_v45  ;;  %v617_v47 = vsub.f32 %v608_v36, %v615_v46 }
 0x30d   : > { %v620_v48 = vmul.f32 1.442695, %v617_v47 }
 0x30f   : > { %1206 = vpow2.f32 %v620_v48 }
 0x315   : > { %v1205_v49 = vpop.eup %1204 }
 0x316   : > { %v622_v50 = vsel %vm609_vm5, %v1205_v49, 0.0 }
 0x317   : > { %623 = vadd.xlane.f32.xlu1 %v622_v50 }
 0x319   : > { %v1207_v51 = vpop.eup %1206 }
 0x31a   : > { %v625_v52 = vsel %vm609_vm5, %v1207_v51, 0.0 }
 0x31b   : > { %626 = vadd.xlane.f32.xlu1 %v625_v52 }
 0x3a4   : > { %v624_v53 = vpop.xlane.xlu1 %623 }
 0x3a5   : > { %1208 = vrcp.f32 %v624_v53 }
 0x3a8   : > { %v627_v54 = vpop.xlane.xlu1 %626 }
 0x3a9   : > { %1210 = vrcp.f32 %v627_v54 }
 0x3af   : > { %v1209_v55 = vpop.eup %1208 }
 0x3b0   : > { %v630_v56 = vmul.f32 %v1209_v55, %v1205_v49 }
 0x3b2   : > { %v632_v57 = vpack.c.bf16 %v630_v56, %v630_v56 }
 0x3b3   : > { %v1211_v58 = vpop.eup %1210 }
 0x3b4   : > { %v631_v59 = vmul.f32 %v1211_v58, %v1207_v51  ;;  %1049 = vmatmul.mubr.msk.bf16.vlgmr.msra.gmra.mrb[8].mxu1 %vm609_vm5, %v632_v57 }
 0x3b5   : > { %1060 = vmatprep.mubr.msk.bf16.mxu1 %vm1470_vm1, %v1469_v2  ;;  %1059 = vmatpush3.bf16.msra.mxu1 %v735_v62  ;;  %v728_v2 = vld [vmem:[#allocation2] sm:$0xff] }
 0x3b6   : > { %v633_v60 = vpack.c.bf16 %v631_v59, %v631_v59 }
 0x3b8   : > { %1055 = vmatmul.mubr.msk.bf16.vlgmr.msra.gmra.mrb[12].mxu0 %vm609_vm5, %v633_v60 }
 0x487   : > { %v675_v63 = vpop.f32.mrb[8].mxu1 }
 0x488   : > { %v1050_v0 = vpop.f32.mrb[9].mxu1 }
 0x489   : > { %v678_v1 = vpop.f32.mrb[10].mxu1 }
 0x48a   : > { %v1051_v3 = vpop.f32.mrb[11].mxu1 }
 0x48b   : > { %v721_v4 = vpop.f32.mrb[12].mxu0 }
 0x48c   : > { %v727_v5 = vpack.c.bf16 %v721_v4, %v675_v63  ;;  %v1056_v6 = vpop.f32.mrb[13].mxu0 }
 0x48d   : > { %v724_v7 = vpop.f32.mrb[14].mxu0 }
 0x48e   : > { %v1057_v8 = vpop.f32.mrb[15].mxu0  ;;  %1061 = vmatmul.mubr.msk.bf16.vlgmr.msra.gmra.mrb[12].mxu1 %vm514_vm3, %v727_v5 }
 0x560   : > { %785 = sbr.rel (%p982_p8) target bundleno = 1393 (0x571), region = 60 }
 0x561   : > { %v771_v9 = vpop.f32.mrb[12].mxu1 }
 0x562   : > { %v778_v11 = vadd.f32 %v771_v9, %v728_v2  ;;  %v1062_v12 = vpop.f32.mrb[13].mxu1 }
 0x563   : > { %v774_v13 = vpop.f32.mrb[14].mxu1 }
 0x564   : > { %780 = vst.msk [vmem:[#allocation2] sm:$0xff] %vm357_vm2, %v778_v11  ;;  %v779_v14 = vadd.f32 %v774_v13, %v729_v10  ;;  %v1063_v15 = vpop.f32.mrb[15].mxu1 }
 0x566   : > { %781 = vst.msk [vmem:[#allocation2 + $0x8] sm:$0xff] %vm357_vm2, %v779_v14 }
 0x56b   : > { %v786_v16 = vld [vmem:[#allocation2] sm:$0xff] }
 0x56c   : > { %v795_v19 = vadd.f32 %v983_v17, %v786_v16 }
 0x56d   : > { %v787_v18 = vld [vmem:[#allocation2 + $0x8] sm:$0xff] }
 0x56e   : > { %v796_v20 = vadd.f32 %v983_v17, %v787_v18  ;;  %797 = vst.msk [vmem:[%s1820_s10] sm:$0xff] %vm357_vm2, %v795_v19 }
 0x570   : > { %798 = vst.msk [vmem:[%s1820_s10 + $0x8] sm:$0xff] %vm357_vm2, %v796_v20 }
 0x571 PF: > { %s990_s8 = sshll.u32 %s1448_s22, 8  ;;  %s2013_s7 = sld [smem:[#allocation24_spill]] }
 0x572   : > { %s813_s6 = sshll.u32 %s1820_s10, 4  ;;  %s800_s1 = scalar_lea.sflag [#allocation5], %s1794_s5  ;;  %s1887_s6 = int_to_ptr.vmem [resolvable:$true] %s813_s6 }
 0x573   : > { %s1330_s24 = scalar_lea.vmem %s1887_s6, 256  ;;  %p2014_p13 = scmp.ne.s32.totalorder %s1988_s15, 0 }
 0x574   : > { %p1331_p7 = scmp.ne.s32.totalorder %s1887_s6, %s1330_s24  ;;  %s1471_s3 = smov [#allocation11]  }
 0x575   : > { %s1334_s27 = sshll.u32 %s1471_s3, 4  ;;  %s1335_s27 = int_to_ptr.vmem [resolvable:$false] %s1334_s27 }
 0x576   : > { %p1332_p0 = pnand %p1331_p7, %p2014_p13  ;;  %s1336_s22 = scalar_lea.vmem %s1335_s27, 512 }
 0x577   : > { %s1884_s18 = scalar_lea.hbm %s2013_s7, %s990_s8  ;;  %p1337_p2 = scmp.lt.s32.totalorder %s1887_s6, %s1335_s27 }
 0x578   : > { %p1333_p3 = pneg %p1332_p0  ;;  %p1338_p10 = scmp.lt.s32.totalorder %s1336_s22, %s1330_s24 }
 0x57a   : > { %p1339_p11 = por %p1338_p10, %p1337_p2 }
 0x57c   : > { %p1340_p1 = pnand %p1339_p11, %p1333_p3 }
 0x57e   : > { %1343 = shalt.err (!%p1340_p1)
}
 0x57f   : > { %s1344_s9 = scalar_lea.hbm %s1884_s18, 256  ;;  %s1348_s29 = scalar_lea.hbm %s2013_s7, 512 }
 0x580   : > { %p1345_p6 = scmp.ne.s32.totalorder %s1884_s18, %s1344_s9  ;;  %p1349_p9 = scmp.lt.u32.totalorder %s1884_s18, %s2013_s7 }
 0x581   : > { %p1350_p12 = scmp.lt.u32.totalorder %s1348_s29, %s1344_s9  ;;  %p1352_p7 = scmp.lt.u32.totalorder %s1344_s9, %s1884_s18 }
 0x582   : > { %p1346_p4 = pnand %p1345_p6, %p2014_p13 }
 0x583   : > { %p1351_p8 = por %p1350_p12, %p1349_p9 }
 0x584   : > { %p1347_p5 = pneg %p1346_p4 }
 0x585   : > { %p1353_p0 = por %p1352_p7, %p1351_p8 }
 0x587   : > { %p1354_p3 = pnand %p1353_p0, %p1347_p5 }
 0x589   : > { %1357 = shalt.err (!%p1354_p3)
}
 0x58a   : > { %s1472_s12 = smov 128   ;;  %s1473_s11 = smov 8  }
 0x58b   : > { %1077 = dma.vmem_to_hbm [thread:$0]  (%p2014_p13), %s1887_s6, 256, %s1884_s18, %s800_s1, %s1472_s12, %s1472_s12, %s1473_s11  }
 0x58c PF: > { %s2015_s10 = sld [smem:[#allocation16_spill]]  ;;  %s2016_s8 = sld [smem:[#allocation20_spill]] }
 0x58d   : > { %p1100_p2 = scmp.ge.s32.totalorder %s1460_s25, 2 }
 0x592   : > { %s828_s14 = sand.u32 1, %s2015_s10   ;;  %p2017_p10 = scmp.ne.s32.totalorder %s2016_s8, 0 }
 0x593   : > { %s829_s21 = scalar_lea.sflag [#allocation5], %s828_s14 }
 0x594   : > { %p1094_p11 = pnand %p1100_p2, %p2017_p10 }
 0x596   : > { %1415 = dma.done.wait (!%p1094_p11), %s829_s21, 256  }
 0x597   : > { %1417 = vsyncadd (!%p1094_p11), %s829_s21, 4294967040  ;;  %s24_s25 = sadd.s32 1, %s1460_s25   ;;  %s2018_s24 = sld [smem:[#allocation19_spill]] }
 0x598   : > { %p21_p1 = scmp.ge.s32.totalorder %s24_s25, 18   ;;  %s2019_s22 = sld [smem:[#allocation17_spill]] }
 0x599   : > { %s2020_s5 = sld [smem:[#allocation18_spill]]  ;;  %s2021_s6 = sld [smem:[#allocation21_spill]] }
 0x59a   : > { %s2022_s15 = smov %s1424_s16  ;;  %s2023_s16 = smov %s1428_s17 }
 0x59b   : > { %s2025_s18 = smov %s1436_s19  ;;  %s2026_s19 = smov %s1440_s20 }
 0x59c   : > { %s2027_s20 = smov %s1728_s26  ;;  %s2028_s21 = smov %s1452_s23 }
 0x59d   : > { %s2024_s17 = smov %s2018_s24  ;;  %23 = sbr.rel (!%p21_p1) target bundleno = 16 (0x10), region = 117 }
 0x59f   : > { %s2029_s23 = smov %s2020_s5  ;;  %s2030_s24 = smov %s2021_s6 }
 0x5a4   :  { %834 = vsyncpa [#allocation4], 1 }
 0x5a5   :  { %836 = vsyncpa [#allocation4 + $0x1], 1 }
 0x5a6   :  { %837 = vsyncpa [#allocation7], 1 }
 0x5a7   :  { %839 = vsyncpa [#allocation7 + $0x1], 1 }
 0x5a8   :  { %840 = vsyncpa [#allocation10], 1 }
 0x5a9   :  { %841 = vsyncpa [#allocation5], 1 }
 0x5aa   :  { %843 = vsyncpa [#allocation5 + $0x1], 1 }

</bundles_post_ra>
